<compile_context>
chip_gen: v7x
topology: tpu7x:2x2x1
jax: 0.10.0
libtpu: 0.0.40
codegen_flags: <defaults>
</compile_context>

<pallas_src>
import functools

import jax
import jax.numpy as jnp
from jax.experimental import pallas as pl
from jax.experimental.pallas import tpu as pltpu

IN_PAD = 8      # x columns padded 5 -> 8 (sublane-friendly, tiny DMA)
OUT_PAD = 8     # output columns padded 4 -> 8 (narrow HBM writeback)
W2_COLS = 128   # layer-2 weight columns padded to one MXU lane tile


def _round_up(x, m):
    return ((x + m - 1) // m) * m


def _nerf_kernel(x_ref, w0_ref, b0_ref, w1_ref, b1_ref, w2_ref, b2_ref, o_ref,
                 *, act_dtype, out_cols):
    """relu(x@W0+b0) -> relu(.@W1+b1) -> .@W2+b2 for one batch tile."""
    # Layer 0: bf16 MXU matmul on the narrow (bm, 8) tile, f32 accumulate.
    acc0 = jnp.dot(x_ref[...], w0_ref[...],
                   preferred_element_type=jnp.float32)
    h = jnp.maximum(acc0 + b0_ref[...], 0.0).astype(act_dtype)

    # Layer 1: bf16 MXU matmul, f32 accumulate, epilogue in act_dtype.
    acc1 = jnp.dot(h.astype(jnp.bfloat16), w1_ref[...],
                   preferred_element_type=jnp.float32)
    h = jnp.maximum(acc1 + b1_ref[...], 0.0).astype(act_dtype)

    # Layer 2: bf16 MXU matmul into a 128-lane f32 accumulator; bias add on
    # the full dense width, slice to the narrow output only at the store.
    o = jnp.dot(h.astype(jnp.bfloat16), w2_ref[...],
                preferred_element_type=jnp.float32) + b2_ref[...]
    o_ref[...] = o[:, :out_cols].astype(o_ref.dtype)


def _device_kind():
    try:
        return jax.devices()[0].device_kind.lower()
    except Exception:  # pragma: no cover - e.g. no devices during tracing
        return ""


def _auto_block_m(n, num_cores, cap=1024):
    """Batch tile: large (amortize ~0.35us/step), one step/core when possible."""
    if n <= 8:
        return 8
    if n <= cap * num_cores:
        return _round_up(pl.cdiv(n, num_cores), 8)
    return cap


@functools.partial(jax.jit, static_argnames=("block_m",))
def nerf_forward(x, params, block_m=None):
    """Run the NeRF MLP forward pass via a fused Pallas kernel.

    Args:
      x: (N, input_size) float32 input points (input_size <= 8).
      params: dict with w0,b0,w1,b1,w2,b2; w_i stored as (in, out).
      block_m: optional batch tile size (multiple of 8). Auto-picked if None.
    Returns:
      (N, output_size) float32 output.
    """
    n, in_dim = x.shape
    hidden = params["w0"].shape[1]
    out_dim = params["w2"].shape[1]
    assert in_dim <= IN_PAD, in_dim
    assert out_dim <= OUT_PAD, out_dim
    assert hidden % 128 == 0, "hidden must be a multiple of 128 for MXU tiling"

    kind = _device_kind()
    # bf16 epilogues only where the VPU is natively bf16 (v6e / v7x).
    use_bf16_act = ("v6" in kind) or ("v7" in kind)
    act_dtype = jnp.bfloat16 if use_bf16_act else jnp.float32
    num_cores = 2 if "v7" in kind else 1

    if block_m is None:
        block_m = _auto_block_m(n, num_cores)
    n_pad = _round_up(n, block_m)
    n_steps = n_pad // block_m
    # v7x megacore: keep the parallel grid axis an even length when >1 step.
    if num_cores > 1 and n_steps > 1 and n_steps % 2 == 1:
        n_pad += block_m
        n_steps += 1

    # ---- host-side parameter / input prep (cheap, fused by XLA) ----
    xp = jnp.pad(x, ((0, n_pad - n), (0, IN_PAD - in_dim)))
    xp = xp.astype(jnp.bfloat16)                                      # (N, 8)
    w0 = jnp.pad(params["w0"], ((0, IN_PAD - in_dim), (0, 0)))
    w0 = w0.astype(jnp.bfloat16)                                      # (8, H)
    b0 = params["b0"].reshape(1, hidden)                              # f32
    w1 = params["w1"].astype(jnp.bfloat16)                            # (H, H)
    b1 = params["b1"].reshape(1, hidden)                              # f32
    w2 = jnp.pad(params["w2"],
                 ((0, 0), (0, W2_COLS - out_dim))).astype(jnp.bfloat16)
    b2 = jnp.pad(params["b2"], (0, W2_COLS - out_dim)).reshape(1, W2_COLS)

    grid = (n_steps,)

    flops = 2 * n_pad * hidden * (IN_PAD + hidden + W2_COLS)
    bytes_accessed = (n_pad * IN_PAD * 2            # x (bf16)
                      + IN_PAD * hidden * 2         # W0 (bf16)
                      + hidden * hidden * 2         # W1 (bf16)
                      + hidden * W2_COLS * 2        # W2 (bf16)
                      + (2 * hidden + W2_COLS) * 4  # biases (f32)
                      + n_pad * OUT_PAD * 4)        # out (f32)
    cost = pl.CostEstimate(flops=flops, transcendentals=0,
                           bytes_accessed=bytes_accessed)

    kernel = functools.partial(_nerf_kernel, act_dtype=act_dtype,
                               out_cols=OUT_PAD)

    out = pl.pallas_call(
        kernel,
        out_shape=jax.ShapeDtypeStruct((n_pad, OUT_PAD), jnp.float32),
        grid_spec=pltpu.PrefetchScalarGridSpec(
            num_scalar_prefetch=0,
            grid=grid,
            in_specs=[
                pl.BlockSpec((block_m, IN_PAD), lambda i: (i, 0)),   # x tile
                pl.BlockSpec((IN_PAD, hidden), lambda i: (0, 0)),    # W0
                pl.BlockSpec((1, hidden), lambda i: (0, 0)),         # b0
                pl.BlockSpec((hidden, hidden), lambda i: (0, 0)),    # W1
                pl.BlockSpec((1, hidden), lambda i: (0, 0)),         # b1
                pl.BlockSpec((hidden, W2_COLS), lambda i: (0, 0)),   # W2
                pl.BlockSpec((1, W2_COLS), lambda i: (0, 0)),        # b2
            ],
            out_specs=pl.BlockSpec((block_m, OUT_PAD), lambda i: (i, 0)),
        ),
        compiler_params=pltpu.CompilerParams(
            dimension_semantics=("parallel",)),
        cost_estimate=cost,
    )(xp, w0, b0, w1, b1, w2, b2)

    return out[:n, :out_dim]


def init_nerf_params(key, num_hidden=256, input_size=5, output_size=4):
    """Deterministic synthetic parameters (w stored as (in, out))."""
    k0, k1, k2, k3, k4, k5 = jax.random.split(key, 6)
    s = 0.05
    return {
        "w0": s * jax.random.normal(k0, (input_size, num_hidden), jnp.float32),
        "b0": s * jax.random.normal(k1, (num_hidden,), jnp.float32),
        "w1": s * jax.random.normal(k2, (num_hidden, num_hidden), jnp.float32),
        "b1": s * jax.random.normal(k3, (num_hidden,), jnp.float32),
        "w2": s * jax.random.normal(k4, (num_hidden, output_size), jnp.float32),
        "b2": s * jax.random.normal(k5, (output_size,), jnp.float32),
    }


def nerf_reference(x, p):
    """Pure-JAX f32 reference matching the PyTorch forward (use_leaky_relu=False)."""
    h = jnp.maximum(x @ p["w0"] + p["b0"], 0.0)
    h = jnp.maximum(h @ p["w1"] + p["b1"], 0.0)
    return h @ p["w2"] + p["b2"]


if __name__ == "__main__":
    key = jax.random.PRNGKey(0)
    k_x, k_p = jax.random.split(key)

    batch = 16          # small batch of sample points
    input_size = 5      # (x, y, z, theta, phi)
    output_size = 4     # (r, g, b, sigma)
    num_hidden = 256

    x = jax.random.normal(k_x, (batch, input_size), jnp.float32)
    params = init_nerf_params(k_p, num_hidden, input_size, output_size)

    out = nerf_forward(x, params)
    out = jax.block_until_ready(out)

    ref = nerf_reference(x, params)
    assert out.shape == (batch, output_size), out.shape
    # bf16 matmul operands / inputs (f32 accumulation) -> looser tolerance.
    assert jnp.allclose(out, ref, atol=1e-2, rtol=1e-2), \
        float(jnp.max(jnp.abs(out - ref)))

    print("KERNEL_OK")
</pallas_src>

<mosaic_0001>
module attributes {stable_mosaic.version = 11 : i64} {
  func.func @_nerf_kernel(%arg0: i32, %arg1: memref<16x8xbf16, #tpu.memory_space<vmem>>, %arg2: memref<8x256xbf16, #tpu.memory_space<vmem>>, %arg3: memref<1x256xf32, #tpu.memory_space<vmem>>, %arg4: memref<256x256xbf16, #tpu.memory_space<vmem>>, %arg5: memref<1x256xf32, #tpu.memory_space<vmem>>, %arg6: memref<256x128xbf16, #tpu.memory_space<vmem>>, %arg7: memref<1x128xf32, #tpu.memory_space<vmem>>, %arg8: memref<16x8xf32, #tpu.memory_space<vmem>>) attributes {dimension_semantics = [#tpu.dimension_semantics<parallel>], iteration_bounds = array<i64: 1>, scalar_prefetch = 0 : i64, scratch_operands = 0 : i64, tpu.core_type = #tpu.core_type<tc>, window_params = [{transform_indices = @transform_0, window_bounds = array<i64: 16, 8>}, {pipeline_mode = #tpu.pipeline_mode<synchronous>, transform_indices = @transform_1, window_bounds = array<i64: 8, 256>}, {pipeline_mode = #tpu.pipeline_mode<synchronous>, transform_indices = @transform_2, window_bounds = array<i64: 1, 256>}, {pipeline_mode = #tpu.pipeline_mode<synchronous>, transform_indices = @transform_3, window_bounds = array<i64: 256, 256>}, {pipeline_mode = #tpu.pipeline_mode<synchronous>, transform_indices = @transform_4, window_bounds = array<i64: 1, 256>}, {pipeline_mode = #tpu.pipeline_mode<synchronous>, transform_indices = @transform_5, window_bounds = array<i64: 256, 128>}, {pipeline_mode = #tpu.pipeline_mode<synchronous>, transform_indices = @transform_6, window_bounds = array<i64: 1, 128>}, {transform_indices = @transform_7, window_bounds = array<i64: 16, 8>}]} {
    %c0 = arith.constant 0 : index
    %c0_0 = arith.constant 0 : index
    %0 = vector.load %arg1[%c0, %c0_0] : memref<16x8xbf16, #tpu.memory_space<vmem>>, vector<16x8xbf16>
    %c0_1 = arith.constant 0 : index
    %c0_2 = arith.constant 0 : index
    %1 = vector.load %arg2[%c0_1, %c0_2] : memref<8x256xbf16, #tpu.memory_space<vmem>>, vector<8x256xbf16>
    %cst = arith.constant dense<0.000000e+00> : vector<16x256xf32>
    %2 = tpu.matmul %0, %1, %cst {dimension_numbers = #tpu.dot_dimension_numbers<[1], [0], [0], [1], [0, 0, 1, 1], [], []>} : vector<16x8xbf16>, vector<8x256xbf16>, vector<16x256xf32> -> vector<16x256xf32>
    %c0_3 = arith.constant 0 : index
    %c0_4 = arith.constant 0 : index
    %3 = vector.load %arg3[%c0_3, %c0_4] : memref<1x256xf32, #tpu.memory_space<vmem>>, vector<1x256xf32>
    %4 = vector.broadcast %3 : vector<1x256xf32> to vector<16x256xf32>
    %5 = arith.addf %2, %4 : vector<16x256xf32>
    %cst_5 = arith.constant 0.000000e+00 : f32
    %6 = vector.broadcast %cst_5 : f32 to vector<16x256xf32>
    %7 = arith.maximumf %5, %6 : vector<16x256xf32>
    %8 = arith.truncf %7 : vector<16x256xf32> to vector<16x256xbf16>
    %c0_6 = arith.constant 0 : index
    %c0_7 = arith.constant 0 : index
    %9 = vector.load %arg4[%c0_6, %c0_7] : memref<256x256xbf16, #tpu.memory_space<vmem>>, vector<256x256xbf16>
    %cst_8 = arith.constant dense<0.000000e+00> : vector<16x256xf32>
    %10 = tpu.matmul %8, %9, %cst_8 {dimension_numbers = #tpu.dot_dimension_numbers<[1], [0], [0], [1], [0, 0, 1, 1], [], []>} : vector<16x256xbf16>, vector<256x256xbf16>, vector<16x256xf32> -> vector<16x256xf32>
    %c0_9 = arith.constant 0 : index
    %c0_10 = arith.constant 0 : index
    %11 = vector.load %arg5[%c0_9, %c0_10] : memref<1x256xf32, #tpu.memory_space<vmem>>, vector<1x256xf32>
    %12 = vector.broadcast %11 : vector<1x256xf32> to vector<16x256xf32>
    %13 = arith.addf %10, %12 : vector<16x256xf32>
    %cst_11 = arith.constant 0.000000e+00 : f32
    %14 = vector.broadcast %cst_11 : f32 to vector<16x256xf32>
    %15 = arith.maximumf %13, %14 : vector<16x256xf32>
    %16 = arith.truncf %15 : vector<16x256xf32> to vector<16x256xbf16>
    %c0_12 = arith.constant 0 : index
    %c0_13 = arith.constant 0 : index
    %17 = vector.load %arg6[%c0_12, %c0_13] : memref<256x128xbf16, #tpu.memory_space<vmem>>, vector<256x128xbf16>
    %cst_14 = arith.constant dense<0.000000e+00> : vector<16x128xf32>
    %18 = tpu.matmul %16, %17, %cst_14 {dimension_numbers = #tpu.dot_dimension_numbers<[1], [0], [0], [1], [0, 0, 1, 1], [], []>} : vector<16x256xbf16>, vector<256x128xbf16>, vector<16x128xf32> -> vector<16x128xf32>
    %c0_15 = arith.constant 0 : index
    %c0_16 = arith.constant 0 : index
    %19 = vector.load %arg7[%c0_15, %c0_16] : memref<1x128xf32, #tpu.memory_space<vmem>>, vector<1x128xf32>
    %20 = vector.broadcast %19 : vector<1x128xf32> to vector<16x128xf32>
    %21 = arith.addf %18, %20 : vector<16x128xf32>
    %22 = vector.extract_strided_slice %21 {offsets = [0, 0], sizes = [16, 8], strides = [1, 1]} : vector<16x128xf32> to vector<16x8xf32>
    %c0_17 = arith.constant 0 : index
    %c0_18 = arith.constant 0 : index
    %23 = vector.load %arg8[%c0_17, %c0_18] : memref<16x8xf32, #tpu.memory_space<vmem>>, vector<16x8xf32>
    tpu.vector_store %arg8[%c0_17, %c0_18], %22 {strides = array<i32>} : memref<16x8xf32, #tpu.memory_space<vmem>>, vector<16x8xf32>,
    return
  }
  func.func @transform_0(%arg0: i32) -> (i32, i32) {
    %c0_i32 = arith.constant 0 : i32
    %c0_i32_0 = arith.constant 0 : i32
    return %arg0, %c0_i32 : i32, i32
  }
  func.func @transform_1(%arg0: i32) -> (i32, i32) {
    %c0_i32 = arith.constant 0 : i32
    %c0_i32_0 = arith.constant 0 : i32
    %c0_i32_1 = arith.constant 0 : i32
    return %c0_i32, %c0_i32_0 : i32, i32
  }
  func.func @transform_2(%arg0: i32) -> (i32, i32) {
    %c0_i32 = arith.constant 0 : i32
    %c0_i32_0 = arith.constant 0 : i32
    %c0_i32_1 = arith.constant 0 : i32
    return %c0_i32, %c0_i32_0 : i32, i32
  }
  func.func @transform_3(%arg0: i32) -> (i32, i32) {
    %c0_i32 = arith.constant 0 : i32
    %c0_i32_0 = arith.constant 0 : i32
    %c0_i32_1 = arith.constant 0 : i32
    return %c0_i32, %c0_i32_0 : i32, i32
  }
  func.func @transform_4(%arg0: i32) -> (i32, i32) {
    %c0_i32 = arith.constant 0 : i32
    %c0_i32_0 = arith.constant 0 : i32
    %c0_i32_1 = arith.constant 0 : i32
    return %c0_i32, %c0_i32_0 : i32, i32
  }
  func.func @transform_5(%arg0: i32) -> (i32, i32) {
    %c0_i32 = arith.constant 0 : i32
    %c0_i32_0 = arith.constant 0 : i32
    %c0_i32_1 = arith.constant 0 : i32
    return %c0_i32, %c0_i32_0 : i32, i32
  }
  func.func @transform_6(%arg0: i32) -> (i32, i32) {
    %c0_i32 = arith.constant 0 : i32
    %c0_i32_0 = arith.constant 0 : i32
    %c0_i32_1 = arith.constant 0 : i32
    return %c0_i32, %c0_i32_0 : i32, i32
  }
  func.func @transform_7(%arg0: i32) -> (i32, i32) {
    %c0_i32 = arith.constant 0 : i32
    %c0_i32_0 = arith.constant 0 : i32
    return %arg0, %c0_i32 : i32, i32
  }
}

</mosaic_0001>

<bundles_post_ra>
// kernel: nerf_forward.1
= control target key start
LH: loop header
LB: loop body
LE: loop exit
PB: predicated region body
PF: predicated region fallthrough
CT: control target
= control target key end

     0   :  { %vm56_vm0 = vcmask 1043456   ;;  %v691_v1 = vmov 0   ;;  %vm52_vm1 = vcmask 64512   ;;  %v32_v49 = vlaneseq  ;;  %s900_s1 = inlined_call_operand.vmem [shape: bf16[8,256], index: 1, kind: input, shape index: {}]   ;;  %s901_s0 = inlined_call_operand.vmem [shape: bf16[16,8], index: 0, kind: input, shape index: {}]   ;;  %s902_s3 = inlined_call_operand.vmem [shape: bf16[256,256], index: 3, kind: input, shape index: {}]   ;;  %s903_s5 = inlined_call_operand.vmem [shape: bf16[256,128], index: 5, kind: input, shape index: {}]   ;;  %s904_s2 = inlined_call_operand.vmem [shape: f32[1,256], index: 2, kind: input, shape index: {}]   ;;  %s905_s4 = inlined_call_operand.vmem [shape: f32[1,256], index: 4, kind: input, shape index: {}]   ;;  %s906_s6 = inlined_call_operand.vmem [shape: f32[1,128], index: 6, kind: input, shape index: {}]   ;;  %s907_s7 = inlined_call_operand.vmem [shape: f32[16,8], index: 7, kind: output, shape index: {}]  }
   0x1   :  { %v29_v0 = vld [vmem:[%s900_s1] sm:$0xff]  ;;  %95 = vmatprep.mubr.bf16.mxu0 %v691_v1  ;;  %v630_v8 = vld [vmem:[%s902_s3 + $0x14] ss:$8 sps:$4 sm:$0xff]   ;;  %v632_v9 = vld [vmem:[%s902_s3 + $0x10] ss:$8 sps:$4 sm:$0xff]  }
   0x2   :  { %v549_v2 = vcombine.high %v29_v0, %v29_v0  ;;  %v548_v3 = vcombine.low %v29_v0, %v29_v0  ;;  %v627_v4 = vld [vmem:[%s902_s3 + $0x4] ss:$8 sps:$4 sm:$0xff]   ;;  %v629_v5 = vld [vmem:[%s902_s3] ss:$8 sps:$4 sm:$0xff]   ;;  %v636_v12 = vld [vmem:[%s902_s3 + $0x34] ss:$8 sps:$4 sm:$0xff]  }
   0x3   :  { %v626_v7 = vld [vmem:[%s901_s0] sm:$0xff]   ;;  %316 = vmatprep.subr.bf16.mxu1 %v627_v4  ;;  %v638_v13 = vld [vmem:[%s902_s3 + $0x30] ss:$8 sps:$4 sm:$0xff]   ;;  %v642_v16 = vld [vmem:[%s902_s3 + $0x54] ss:$8 sps:$4 sm:$0xff]   ;;  %v33_v50 = vshrl.u32 %v32_v49, 7 }
   0x4   :  { %550 = vmatprep.subr.msk.bf16.mxu0 %vm56_vm0, %v549_v2  ;;  %v58_v6 = vsel %vm56_vm0, %v548_v3, 0  ;;  %317 = vmatpush1.bf16.msra.mxu1 %v629_v5  ;;  %v633_v10 = vld [vmem:[%s902_s3 + $0x24] ss:$8 sps:$4 sm:$0xff]   ;;  %v635_v11 = vld [vmem:[%s902_s3 + $0x20] ss:$8 sps:$4 sm:$0xff]   ;;  %v679_v42 = vld [vmem:[%s903_s5 + $0x50] sm:$0xff]  }
   0x5   :  { %64 = vmatpush1.bf16.msra.mxu0 %v58_v6  ;;  %318 = vmatprep.subr.bf16.mxu1 %v630_v8  ;;  %v639_v14 = vld [vmem:[%s902_s3 + $0x44] ss:$8 sps:$4 sm:$0xff]   ;;  %v641_v15 = vld [vmem:[%s902_s3 + $0x40] ss:$8 sps:$4 sm:$0xff]   ;;  %v644_v17 = vld [vmem:[%s902_s3 + $0x50] ss:$8 sps:$4 sm:$0xff]  }
   0x6   :  { %v645_v18 = vld [vmem:[%s902_s3 + $0x64] ss:$8 sps:$4 sm:$0xff]   ;;  %v647_v19 = vld [vmem:[%s902_s3 + $0x60] ss:$8 sps:$4 sm:$0xff]   ;;  %v648_v20 = vld [vmem:[%s902_s3 + $0x74] ss:$8 sps:$4 sm:$0xff]  }
   0x7   :  { %v650_v21 = vld [vmem:[%s902_s3 + $0x70] ss:$8 sps:$4 sm:$0xff]   ;;  %v651_v22 = vld [vmem:[%s902_s3 + $0x84] ss:$8 sps:$4 sm:$0xff]   ;;  %v653_v23 = vld [vmem:[%s902_s3 + $0x80] ss:$8 sps:$4 sm:$0xff]  }
   0x8   :  { %551 = vmatmul.mubr.msk.bf16.vlgmr.msra.gmra.mrb[0].mxu0 %vm52_vm1, %v626_v7  ;;  %319 = vmatpush1.bf16.msra.mxu1 %v632_v9  ;;  %v654_v24 = vld [vmem:[%s902_s3 + $0x94] ss:$8 sps:$4 sm:$0xff]   ;;  %v656_v25 = vld [vmem:[%s902_s3 + $0x90] ss:$8 sps:$4 sm:$0xff]   ;;  %v657_v26 = vld [vmem:[%s902_s3 + $0xa4] ss:$8 sps:$4 sm:$0xff]  }
   0x9   :  { %320 = vmatprep.subr.bf16.mxu1 %v633_v10  ;;  %v659_v27 = vld [vmem:[%s902_s3 + $0xa0] ss:$8 sps:$4 sm:$0xff]   ;;  %v660_v28 = vld [vmem:[%s902_s3 + $0xb4] ss:$8 sps:$4 sm:$0xff]   ;;  %v662_v29 = vld [vmem:[%s902_s3 + $0xb0] ss:$8 sps:$4 sm:$0xff]  }
   0xa   :  { %v663_v30 = vld [vmem:[%s902_s3 + $0xc4] ss:$8 sps:$4 sm:$0xff]   ;;  %v665_v31 = vld [vmem:[%s902_s3 + $0xc0] ss:$8 sps:$4 sm:$0xff]   ;;  %v666_v32 = vld [vmem:[%s902_s3 + $0xd4] ss:$8 sps:$4 sm:$0xff]  }
   0xb   :  { %v668_v33 = vld [vmem:[%s902_s3 + $0xd0] ss:$8 sps:$4 sm:$0xff]   ;;  %v669_v34 = vld [vmem:[%s902_s3 + $0xe4] ss:$8 sps:$4 sm:$0xff]   ;;  %v671_v35 = vld [vmem:[%s902_s3 + $0xe0] ss:$8 sps:$4 sm:$0xff]  }
   0xc   :  { %321 = vmatpush1.bf16.msra.mxu1 %v635_v11  ;;  %v672_v36 = vld [vmem:[%s902_s3 + $0xf4] ss:$8 sps:$4 sm:$0xff]   ;;  %v674_v37 = vld [vmem:[%s902_s3 + $0xf0] ss:$8 sps:$4 sm:$0xff]   ;;  %v675_v38 = vld [vmem:[%s903_s5 + $0x40] sm:$0xff]   ;;  %v34_v51 = vsub.s32 0, %v33_v50 }
   0xd   :  { %322 = vmatprep.subr.bf16.mxu1 %v636_v12  ;;  %v676_v39 = vld [vmem:[%s903_s5] sm:$0xff]   ;;  %601 = vmatprep.subr.bf16.mxu0 %v675_v38  ;;  %v677_v40 = vld [vmem:[%s903_s5 + $0x48] sm:$0xff]   ;;  %v680_v43 = vld [vmem:[%s903_s5 + $0x10] sm:$0xff]   ;;  %v38_v53 = vsub.s32 1, %v33_v50 }
   0xe   :  { %602 = vmatpush3.bf16.msra.mxu0 %v676_v39  ;;  %v678_v41 = vld [vmem:[%s903_s5 + $0x8] sm:$0xff]   ;;  %v681_v44 = vld [vmem:[%s903_s5 + $0x58] sm:$0xff]   ;;  %v683_v46 = vld [vmem:[%s903_s5 + $0x60] sm:$0xff]  }
   0xf   :  { %603 = vmatprep.subr.bf16.mxu0 %v677_v40  ;;  %v682_v45 = vld [vmem:[%s903_s5 + $0x18] sm:$0xff]   ;;  %v684_v47 = vld [vmem:[%s903_s5 + $0x20] sm:$0xff]   ;;  %v685_v48 = vld [vmem:[%s903_s5 + $0x68] sm:$0xff]  }
  0x10   :  { %323 = vmatpush1.bf16.msra.mxu1 %v638_v13  ;;  %v30_v52 = vld [vmem:[%s904_s2] sm:$0x3]  ;;  %v686_v6 = vld [vmem:[%s903_s5 + $0x28] sm:$0xff]   ;;  %v687_v7 = vld [vmem:[%s903_s5 + $0x70] sm:$0xff]  }
  0x11   :  { %324 = vmatprep.subr.bf16.mxu1 %v639_v14  ;;  %v35_v54 = vrot.slane %v30_v52, %v34_v51  ;;  %v39_v55 = vrot.slane %v30_v52, %v38_v53  ;;  %v688_v8 = vld [vmem:[%s903_s5 + $0x30] sm:$0xff]   ;;  %v689_v9 = vld [vmem:[%s903_s5 + $0x78] sm:$0xff]   ;;  %v144_v11 = vld [vmem:[%s905_s4] sm:$0x3] }
  0x12   :  { %604 = vmatpush3.bf16.msra.mxu0 %v678_v41  ;;  %v690_v10 = vld [vmem:[%s903_s5 + $0x38] sm:$0xff]   ;;  %v149_v12 = vrot.slane %v144_v11, %v34_v51  ;;  %v153_v13 = vrot.slane %v144_v11, %v38_v53 }
  0x13   :  { %605 = vmatprep.subr.bf16.mxu0 %v679_v42 }
  0x14   :  { %325 = vmatpush1.bf16.msra.mxu1 %v641_v15 }
  0x15   :  { %326 = vmatprep.subr.bf16.mxu1 %v642_v16 }
  0x16   :  { %606 = vmatpush3.bf16.msra.mxu0 %v680_v43 }
  0x17   :  { %607 = vmatprep.subr.bf16.mxu0 %v681_v44 }
  0x18   :  { %327 = vmatpush1.bf16.msra.mxu1 %v644_v17 }
  0x19   :  { %328 = vmatprep.subr.bf16.mxu1 %v645_v18 }
  0x1a   :  { %608 = vmatpush3.bf16.msra.mxu0 %v682_v45 }
  0x1b   :  { %609 = vmatprep.subr.bf16.mxu0 %v683_v46 }
  0x1c   :  { %329 = vmatpush1.bf16.msra.mxu1 %v647_v19 }
  0x1d   :  { %330 = vmatprep.subr.bf16.mxu1 %v648_v20 }
  0x1e   :  { %610 = vmatpush3.bf16.msra.mxu0 %v684_v47 }
  0x1f   :  { %611 = vmatprep.subr.bf16.mxu0 %v685_v48 }
  0x20   :  { %331 = vmatpush1.bf16.msra.mxu1 %v650_v21 }
  0x21   :  { %332 = vmatprep.subr.bf16.mxu1 %v651_v22 }
  0x22   :  { %612 = vmatpush3.bf16.msra.mxu0 %v686_v6 }
  0x23   :  { %613 = vmatprep.subr.bf16.mxu0 %v687_v7 }
  0x24   :  { %333 = vmatpush1.bf16.msra.mxu1 %v653_v23 }
  0x25   :  { %334 = vmatprep.subr.bf16.mxu1 %v654_v24 }
  0x26   :  { %614 = vmatpush3.bf16.msra.mxu0 %v688_v8 }
  0x27   :  { %615 = vmatprep.subr.bf16.mxu0 %v689_v9 }
  0x28   :  { %335 = vmatpush1.bf16.msra.mxu1 %v656_v25 }
  0x29   :  { %336 = vmatprep.subr.bf16.mxu1 %v657_v26 }
  0x2a   :  { %616 = vmatpush3.bf16.msra.mxu0 %v690_v10 }
  0x2c   :  { %337 = vmatpush1.bf16.msra.mxu1 %v659_v27 }
  0x2d   :  { %338 = vmatprep.subr.bf16.mxu1 %v660_v28 }
  0x30   :  { %339 = vmatpush1.bf16.msra.mxu1 %v662_v29  ;;  %v584_v29 = vld [vmem:[%s906_s6] ss:$0 sm:$0xff] }
  0x31   :  { %340 = vmatprep.subr.bf16.mxu1 %v663_v30 }
  0x34   :  { %341 = vmatpush1.bf16.msra.mxu1 %v665_v31 }
  0x35   :  { %342 = vmatprep.subr.bf16.mxu1 %v666_v32 }
  0x38   :  { %343 = vmatpush1.bf16.msra.mxu1 %v668_v33 }
  0x39   :  { %344 = vmatprep.subr.bf16.mxu1 %v669_v34 }
  0x3c   :  { %345 = vmatpush1.bf16.msra.mxu1 %v671_v35 }
  0x3d   :  { %346 = vmatprep.subr.bf16.mxu1 %v672_v36 }
  0x40   :  { %347 = vmatpush1.bf16.msra.mxu1 %v674_v37 }
  0xdb   :  { %v97_v56 = vpop.f32.mrb[0].mxu0 }
  0xdc   :  { %v98_v57 = vadd.f32 %v97_v56, %v35_v54  ;;  %v99_v58 = vpop.f32.mrb[1].mxu0 }
  0xdd   :  { %v100_v59 = vadd.f32 %v99_v58, %v39_v55  ;;  %v101_v60 = vpop.f32.mrb[2].mxu0 }
  0xde   :  { %v102_v61 = vadd.f32 %v101_v60, %v35_v54  ;;  %v103_v62 = vpop.f32.mrb[3].mxu0  ;;  %v106_v0 = vmax.f32 %v98_v57, 0.0 }
  0xdf   :  { %v104_v63 = vadd.f32 %v103_v62, %v39_v55  ;;  %v107_v2 = vmax.f32 %v100_v59, 0.0 }
  0xe0   :  { %v108_v1 = vmax.f32 %v102_v61, 0.0 }
  0xe1   :  { %v109_v3 = vmax.f32 %v104_v63, 0.0 }
  0xe2   :  { %v110_v4 = vpack.c.bf16 %v108_v1, %v106_v0 }
  0xe3   :  { %v111_v5 = vpack.c.bf16 %v109_v3, %v107_v2 }
  0xe5   :  { %348 = vmatprep.mubr.bf16.mxu1 %v111_v5 }
  0xe6   :  { %349 = vmatmul.mubr.bf16.vlgmr.msra.gmra.mrb[0].mxu1 %v110_v4 }
 0x1b9   :  { %v350_v14 = vpop.f32.mrb[0].mxu1 }
 0x1ba   :  { %v351_v15 = vadd.f32 %v350_v14, %v149_v12  ;;  %v352_v16 = vpop.f32.mrb[1].mxu1 }
 0x1bb   :  { %v353_v17 = vadd.f32 %v352_v16, %v153_v13  ;;  %v354_v18 = vpop.f32.mrb[2].mxu1 }
 0x1bc   :  { %v355_v19 = vadd.f32 %v354_v18, %v149_v12  ;;  %v356_v20 = vpop.f32.mrb[3].mxu1  ;;  %v359_v22 = vmax.f32 %v351_v15, 0.0 }
 0x1bd   :  { %v357_v21 = vadd.f32 %v356_v20, %v153_v13  ;;  %v360_v24 = vmax.f32 %v353_v17, 0.0 }
 0x1be   :  { %v361_v23 = vmax.f32 %v355_v19, 0.0 }
 0x1bf   :  { %v362_v25 = vmax.f32 %v357_v21, 0.0 }
 0x1c0   :  { %v363_v26 = vpack.c.bf16 %v361_v23, %v359_v22 }
 0x1c1   :  { %v364_v27 = vpack.c.bf16 %v362_v25, %v360_v24 }
 0x1c3   :  { %532 = vmatprep.mubr.bf16.mxu0 %v364_v27 }
 0x1c4   :  { %533 = vmatmul.mubr.bf16.vlgmr.msra.gmra.mrb[4].mxu0 %v363_v26 }
 0x297   :  { %v617_v28 = vpop.f32.mrb[4].mxu0 }
 0x298   :  { %v618_v30 = vpop.f32.mrb[5].mxu0 }
 0x299   :  { %v619_v31 = vadd.f32 %v618_v30, %v617_v28  ;;  %v620_v32 = vpop.f32.mrb[6].mxu0 }
 0x29a   :  { %v621_v33 = vpop.f32.mrb[7].mxu0 }
 0x29b   :  { %v535_v34 = vadd.f32 %v619_v31, %v584_v29  ;;  %v622_v35 = vadd.f32 %v621_v33, %v620_v32 }
 0x29d   :  { %541 = vst.msk [vmem:[%s907_s7] sm:$0xff] %vm52_vm1, %v535_v34  ;;  %v538_v36 = vadd.f32 %v622_v35, %v584_v29 }
 0x29f   :  { %542 = vst.msk [vmem:[%s907_s7 + $0x8] sm:$0xff] %vm52_vm1, %v538_v36 }

</bundles_post_ra>
